<compile_context>
chip_gen: v6e
topology: v6e:2x2x1
jax: 0.10.0
libtpu: 0.0.40
codegen_flags: <defaults>
</compile_context>

<pallas_src>
import jax
import jax.numpy as jnp
from jax.experimental import pallas as pl
from jax.experimental.pallas import tpu as pltpu

_NEG_BIG = -1e30  # finite "minus infinity" for padded classes (exp underflows to 0)


def _logreg_kernel(x_ref, wt_ref, b_ref, out_ref):
    # x_ref:  [TILE_N, D]   (input dtype; cast to bf16 for the MXU)
    # wt_ref: [D, C_pad]    (bf16, resident across grid steps)
    # b_ref:  [1, C_pad]    (f32, padded classes = -1e30, resident)
    # out_ref:[TILE_N, C_pad] (f32)
    x = x_ref[...].astype(jnp.bfloat16)
    wt = wt_ref[...]
    b = b_ref[...]

    # scores = X @ W_t + b  (native bf16 MXU, f32 accumulate)
    scores = jnp.dot(x, wt, preferred_element_type=jnp.float32) + b  # [TILE_N, C_pad]

    # numerically-stable softmax over classes; padded classes contribute exp(.)=0
    m = jnp.max(scores, axis=1, keepdims=True)
    e = jnp.exp(scores - m)
    denom = jnp.sum(e, axis=1, keepdims=True)

    # approx reciprocal on the EUP + one Newton step on the tiny [TILE_N,1] vector
    inv = pl.reciprocal(denom, approx=True)
    inv = inv * (2.0 - denom * inv)

    out_ref[...] = (e * inv).astype(out_ref.dtype)


def _vmem_capacity_bytes():
    try:
        info = pltpu.get_tpu_info()
        cap = getattr(info, "vmem_capacity_bytes", None)
        if cap:
            return int(cap)
    except Exception:
        pass
    return 64 * 1024 * 1024  # conservative fallback (v7x per-TC)


def _vmem_budget_and_limit():
    cap = _vmem_capacity_bytes()
    # v5e/v6e (128 MiB): ~58 MiB budget / 96 MiB limit; v7x (64 MiB/TC): ~29 / 48 MiB.
    budget = max(16 * 1024 * 1024, min(int(cap * 0.45), 96 * 1024 * 1024))
    limit = max(32 * 1024 * 1024, min(int(cap * 0.75), 100 * 1024 * 1024))
    return budget, limit


def _class_pad_lane(c):
    if c <= 128:
        return 128
    try:
        kind = jax.devices()[0].device_kind.lower()
    except Exception:
        kind = ""
    # v6e/v7x MXUs are 256 wide; keep 128 granularity on v5e and older parts.
    if any(g in kind for g in ("v2", "v3", "v4", "v5")):
        return 128
    return 256


def _choose_tile_n(n, d, c_pad, x_bytes, vmem_budget_bytes):
    """Largest multiple-of-8 row tile fitting the budget, with >=2 grid steps
    when there is enough work (so v7x's second TensorCore is not idle)."""
    # Pallas double-buffers every input, even with a constant index_map.
    resident = 2 * (d * c_pad * 2 + c_pad * 4)  # bf16 W_t + f32 b, x2 buffers
    # double-buffered X tile + double-buffered f32 out tile + f32 temps + bf16 X copy
    per_row = 2 * d * x_bytes + 2 * c_pad * 4 + 3 * c_pad * 4 + d * 2
    avail = max(vmem_budget_bytes - resident, per_row * 8)
    tile = (avail // per_row) // 8 * 8
    tile = int(max(8, min(1024, tile)))
    n_up = ((n + 7) // 8) * 8
    tile = min(tile, n_up)
    if n >= 16:  # give the megacore-parallel N axis at least two row tiles
        half = ((pl.cdiv(n, 2) + 7) // 8) * 8
        tile = min(tile, max(8, half))
    return tile


def pt_logreg_forward(x, w, b):
    """x: [N, D], w: [C, D], b: [C]  ->  probs [N, C] f32 (softmax over classes)."""
    N, D = x.shape
    C = w.shape[0]

    # --- wrapper-side layout prep (done once; W_t/b reused every grid step) ---
    lane = _class_pad_lane(C)
    c_pad = ((C + lane - 1) // lane) * lane
    wt = jnp.zeros((D, c_pad), jnp.bfloat16).at[:, :C].set(w.astype(jnp.bfloat16).T)
    b_pad = jnp.full((1, c_pad), _NEG_BIG, jnp.float32).at[0, :C].set(
        b.astype(jnp.float32)
    )

    x_bytes = jnp.dtype(x.dtype).itemsize
    vmem_budget, vmem_limit = _vmem_budget_and_limit()
    tile_n = _choose_tile_n(N, D, c_pad, x_bytes, vmem_budget)
    grid = (pl.cdiv(N, tile_n),)  # edge block masked; no N-padding copy of X

    cost = pl.CostEstimate(
        flops=2 * N * D * c_pad,
        transcendentals=N * c_pad + N,
        bytes_accessed=N * D * x_bytes + D * c_pad * 2 + c_pad * 4 + N * c_pad * 4,
    )

    probs_pad = pl.pallas_call(
        _logreg_kernel,
        out_shape=jax.ShapeDtypeStruct((N, c_pad), jnp.float32),
        grid_spec=pltpu.PrefetchScalarGridSpec(
            num_scalar_prefetch=0,
            grid=grid,
            in_specs=[
                pl.BlockSpec((tile_n, D), lambda i: (i, 0)),   # X row tiles (pipelined)
                pl.BlockSpec((D, c_pad), lambda i: (0, 0)),    # W_t resident (bf16)
                pl.BlockSpec((1, c_pad), lambda i: (0, 0)),    # b resident (f32)
            ],
            out_specs=pl.BlockSpec((tile_n, c_pad), lambda i: (i, 0)),
        ),
        compiler_params=pltpu.CompilerParams(
            dimension_semantics=("parallel",),  # shard row tiles across v7x's 2 TCs
            vmem_limit_bytes=int(vmem_limit),
        ),
        cost_estimate=cost,
    )(x, wt, b_pad)

    # Padded columns are exactly 0 and rows already sum to 1; the slice is kept
    # only to match the PyTorch signature. Consumers of the padded layout can
    # use probs_pad directly and skip this extra HBM pass.
    return probs_pad if c_pad == C else probs_pad[:, :C]


if __name__ == "__main__":
    # Deterministic init mirroring PTLogreg.__init__: W ~ randn(C, D), b = zeros(C)
    N, D, C = 8, 32, 4
    key = jax.random.PRNGKey(0)
    kx, kw = jax.random.split(key)

    X = jax.random.normal(kx, (N, D), dtype=jnp.float32)
    W = jax.random.normal(kw, (C, D), dtype=jnp.float32)
    b = jnp.zeros((C,), dtype=jnp.float32)

    probs = pt_logreg_forward(X, W, b)
    probs = jax.block_until_ready(probs)

    assert probs.shape == (N, C), "bad output shape"

    # Loose check vs the full-f32 reference (kernel intentionally uses bf16 MXU inputs).
    ref_f32 = jax.nn.softmax(X @ W.T + b, axis=1)
    assert jnp.allclose(probs, ref_f32, atol=2e-2, rtol=2e-2), "mismatch vs f32 reference"

    # Tight check vs a precision-matched (bf16 inputs, f32 accumulate) reference.
    ref_bf16 = jax.nn.softmax(
        jnp.dot(X.astype(jnp.bfloat16), W.astype(jnp.bfloat16).T,
                preferred_element_type=jnp.float32) + b,
        axis=1,
    )
    assert jnp.allclose(probs, ref_bf16, atol=2e-3, rtol=2e-3), "mismatch vs bf16 reference"

    # Softmax normalization is done in f32, so rows must sum to 1 tightly.
    assert jnp.allclose(jnp.sum(probs, axis=1), 1.0, atol=1e-3), "rows must sum to 1"

    print("KERNEL_OK")
</pallas_src>

<mosaic_0001>
module attributes {stable_mosaic.version = 11 : i64} {
  func.func @_logreg_kernel(%arg0: i32, %arg1: memref<8x32xf32, #tpu.memory_space<vmem>>, %arg2: memref<32x128xbf16, #tpu.memory_space<vmem>>, %arg3: memref<1x128xf32, #tpu.memory_space<vmem>>, %arg4: memref<8x128xf32, #tpu.memory_space<vmem>>) attributes {dimension_semantics = [#tpu.dimension_semantics<parallel>], iteration_bounds = array<i64: 1>, scalar_prefetch = 0 : i64, scratch_operands = 0 : i64, tpu.core_type = #tpu.core_type<tc>, window_params = [{transform_indices = @transform_0, window_bounds = array<i64: 8, 32>}, {pipeline_mode = #tpu.pipeline_mode<synchronous>, transform_indices = @transform_1, window_bounds = array<i64: 32, 128>}, {pipeline_mode = #tpu.pipeline_mode<synchronous>, transform_indices = @transform_2, window_bounds = array<i64: 1, 128>}, {transform_indices = @transform_3, window_bounds = array<i64: 8, 128>}]} {
    %c0 = arith.constant 0 : index
    %c0_0 = arith.constant 0 : index
    %0 = vector.load %arg1[%c0, %c0_0] : memref<8x32xf32, #tpu.memory_space<vmem>>, vector<8x32xf32>
    %1 = arith.truncf %0 : vector<8x32xf32> to vector<8x32xbf16>
    %c0_1 = arith.constant 0 : index
    %c0_2 = arith.constant 0 : index
    %2 = vector.load %arg2[%c0_1, %c0_2] : memref<32x128xbf16, #tpu.memory_space<vmem>>, vector<32x128xbf16>
    %c0_3 = arith.constant 0 : index
    %c0_4 = arith.constant 0 : index
    %3 = vector.load %arg3[%c0_3, %c0_4] : memref<1x128xf32, #tpu.memory_space<vmem>>, vector<1x128xf32>
    %cst = arith.constant dense<0.000000e+00> : vector<8x128xf32>
    %4 = tpu.matmul %1, %2, %cst {dimension_numbers = #tpu.dot_dimension_numbers<[1], [0], [0], [1], [0, 0, 1, 1], [], []>} : vector<8x32xbf16>, vector<32x128xbf16>, vector<8x128xf32> -> vector<8x128xf32>
    %5 = vector.broadcast %3 : vector<1x128xf32> to vector<8x128xf32>
    %6 = arith.addf %4, %5 : vector<8x128xf32>
    %cst_5 = arith.constant dense<0xFF800000> : vector<8xf32>
    %7 = vector.multi_reduction <maximumf>, %6, %cst_5 [1] : vector<8x128xf32> to vector<8xf32>
    %8 = vector.shape_cast %7 : vector<8xf32> to vector<8x1xf32>
    %9 = vector.broadcast %8 : vector<8x1xf32> to vector<8x128xf32>
    %10 = arith.subf %6, %9 : vector<8x128xf32>
    %11 = math.exp %10 : vector<8x128xf32>
    %cst_6 = arith.constant dense<0.000000e+00> : vector<8xf32>
    %12 = vector.multi_reduction <add>, %11, %cst_6 [1] : vector<8x128xf32> to vector<8xf32>
    %13 = vector.shape_cast %12 : vector<8xf32> to vector<8x1xf32>
    %14 = tpu.reciprocal %13 {approx = true} : vector<8x1xf32> -> vector<8x1xf32>
    %15 = arith.mulf %13, %14 : vector<8x1xf32>
    %cst_7 = arith.constant 2.000000e+00 : f32
    %16 = vector.broadcast %cst_7 : f32 to vector<8x1xf32>
    %17 = arith.subf %16, %15 : vector<8x1xf32>
    %18 = arith.mulf %14, %17 : vector<8x1xf32>
    %19 = vector.broadcast %18 : vector<8x1xf32> to vector<8x128xf32>
    %20 = arith.mulf %11, %19 : vector<8x128xf32>
    %c0_8 = arith.constant 0 : index
    %c0_9 = arith.constant 0 : index
    %21 = vector.load %arg4[%c0_8, %c0_9] : memref<8x128xf32, #tpu.memory_space<vmem>>, vector<8x128xf32>
    tpu.vector_store %arg4[%c0_8, %c0_9], %20 {strides = array<i32>} : memref<8x128xf32, #tpu.memory_space<vmem>>, vector<8x128xf32>,
    return
  }
  func.func @transform_0(%arg0: i32) -> (i32, i32) {
    %c0_i32 = arith.constant 0 : i32
    %c0_i32_0 = arith.constant 0 : i32
    return %arg0, %c0_i32 : i32, i32
  }
  func.func @transform_1(%arg0: i32) -> (i32, i32) {
    %c0_i32 = arith.constant 0 : i32
    %c0_i32_0 = arith.constant 0 : i32
    %c0_i32_1 = arith.constant 0 : i32
    return %c0_i32, %c0_i32_0 : i32, i32
  }
  func.func @transform_2(%arg0: i32) -> (i32, i32) {
    %c0_i32 = arith.constant 0 : i32
    %c0_i32_0 = arith.constant 0 : i32
    %c0_i32_1 = arith.constant 0 : i32
    return %c0_i32, %c0_i32_0 : i32, i32
  }
  func.func @transform_3(%arg0: i32) -> (i32, i32) {
    %c0_i32 = arith.constant 0 : i32
    %c0_i32_0 = arith.constant 0 : i32
    return %arg0, %c0_i32 : i32, i32
  }
}

</mosaic_0001>

<bundles_post_ra>
// kernel: tpu_custom_call.1
= control target key start
LH: loop header
LB: loop body
LE: loop exit
PB: predicated region body
PF: predicated region fallthrough
CT: control target
= control target key end

     0   :  { %8 = vsyncpa [#allocation3], 0  ;;  %s273_s0 = inlined_call_operand.hbm [shape: f32[8,32], index: 0, kind: input, shape index: {}]   ;;  %s274_s1 = inlined_call_operand.hbm [shape: bf16[32,128], index: 1, kind: input, shape index: {}]   ;;  %s275_s2 = inlined_call_operand.vmem [shape: f32[1,128], index: 2, kind: input, shape index: {}]   ;;  %s276_s3 = inlined_call_operand.hbm [shape: f32[8,128], index: 3, kind: output, shape index: {}]  }
   0x1   :  { %9 = vsyncpa [#allocation6], 0 }
   0x2   :  { %10 = vsyncpa [#allocation4], 0  ;;  %s234_s12 = smov [#allocation2]   ;;  %s235_s14 = smov [#allocation5]  }
   0x3   :  { %s17_s13 = sshll.u32 %s234_s12, 4  ;;  %s26_s15 = sshll.u32 %s235_s14, 4  ;;  %s18_s13 = int_to_ptr.vmem [resolvable:$true] %s17_s13  ;;  %s27_s15 = int_to_ptr.vmem [resolvable:$true] %s26_s15 }
   0x4   :  { %s176_s16 = scalar_lea.vmem %s18_s13, 128  ;;  %p181_p1 = scmp.lt.s32.totalorder %s18_s13, %s18_s13 }
   0x5   :  { %p177_p0 = scmp.ne.s32.totalorder %s18_s13, %s176_s16  ;;  %p182_p2 = scmp.lt.s32.totalorder %s176_s16, %s176_s16 }
   0x7   :  { %p183_p3 = por %p182_p2, %p181_p1 }
   0x9   :  { %p184_p4 = pnand %p183_p3, %p177_p0 }
   0xb   :  { %187 = shalt.err (!%p184_p4)
}
   0xc   :  { %20 = dma.hbm_to_vmem [thread:$0]  %s273_s0, 128, %s18_s13, [#allocation3]  }
   0xd   :  { %s196_s19 = scalar_lea.vmem %s27_s15, 256  ;;  %p201_p6 = scmp.lt.s32.totalorder %s27_s15, %s27_s15 }
   0xe   :  { %p197_p5 = scmp.ne.s32.totalorder %s27_s15, %s196_s19  ;;  %p202_p7 = scmp.lt.s32.totalorder %s196_s19, %s196_s19 }
  0x10   :  { %p203_p8 = por %p202_p7, %p201_p6 }
  0x12   :  { %p204_p9 = pnand %p203_p8, %p197_p5 }
  0x14   :  { %207 = shalt.err (!%p204_p9)
}
  0x15   :  { %s236_s20 = smov 64   ;;  %s237_s21 = smov 4  }
  0x16   :  { %32 = dma.hbm_to_vmem [thread:$0]  %s274_s1, 256, %s27_s15, [#allocation6], %s236_s20, %s236_s20, %s237_s21  }
  0x17   :  { %228 = dma.done.wait [#allocation3], 128  }
  0x18   :  { %229 = vsyncadd [#allocation3], 4294967168 }
  0x19   :  { %230 = dma.done.wait [#allocation6], 256  }
  0x1a   :  { %231 = vsyncadd [#allocation6], 4294967040  ;;  %v238_v0 = vmov 0.0   ;;  %vm239_vm0 = vmmov 0   ;;  %v162_v1 = vld [vmem:[#allocation5 + $0x8] sm:$0xff]   ;;  %v163_v2 = vld [vmem:[#allocation5] sm:$0xff]  }
  0x1b   :  { %147 = vmatprep.subr.bf16.mxu0 %v238_v0  ;;  %151 = vmatprep.mubr.msk.bf16.mxu0 %vm239_vm0, %v238_v0  ;;  %v42_v3 = vld [vmem:[#allocation2] sm:$0xff]  ;;  %vm67_vm1 = vcmask 261120   ;;  %s240_s1 = smov [#allocation7]  }
  0x1c   :  { %148 = vmatpush3.bf16.msra.mxu0 %v162_v1  ;;  %v43_v4 = vpack.c.bf16 %v42_v3, %v42_v3  ;;  %v140_v5 = vld [vmem:[%s275_s2] ss:$0 sm:$0xff]  ;;  %s130_s25 = sshll.u32 %s240_s1, 4  ;;  %s131_s25 = int_to_ptr.vmem [resolvable:$true] %s130_s25 }
  0x1d   :  { %149 = vmatprep.subr.bf16.mxu0 %v238_v0  ;;  %s208_s2 = scalar_lea.vmem %s131_s25, 128  ;;  %p213_p11 = scmp.lt.s32.totalorder %s131_s25, %s131_s25 }
  0x1e   :  { %p209_p10 = scmp.ne.s32.totalorder %s131_s25, %s208_s2  ;;  %p214_p12 = scmp.lt.s32.totalorder %s208_s2, %s208_s2 }
  0x20   :  { %150 = vmatpush3.bf16.msra.mxu0 %v163_v2  ;;  %p215_p13 = por %p214_p12, %p213_p11 }
  0x22   :  { %p216_p0 = pnand %p215_p13, %p209_p10 }
  0x23   :  { %152 = vmatmul.mubr.msk.bf16.vlgmr.msra.gmra.mxu0 %vm67_vm1, %v43_v4 }
  0xe3   :  { %v105_v6 = vpop.f32.mrf.mxu0 }
  0xe4   :  { %v106_v7 = vadd.f32 %v140_v5, %v105_v6 }
  0xe5   :  { %v153_v8 = vpop.f32.mrf.mxu0 }
  0xe6   :  { %111 = vmax.xlane.f32.xlu0 %v106_v7 }
  0xe7   :  { %v108_v9 = vpop.f32.mrf.mxu0 }
  0xe9   :  { %v154_v10 = vpop.f32.mrf.mxu0 }
 0x16f   :  { %v112_v11 = vpop.xlane.xlu0 %111 }
 0x170   :  { %v113_v12 = vsub.f32 %v106_v7, %v112_v11 }
 0x172   :  { %v114_v13 = vmul.f32 1.442695, %v113_v12 }
 0x174   :  { %164 = vpow2.f32 %v114_v13 }
 0x181   :  { %v165_v14 = vpop.eup %164 }
 0x182   :  { %116 = vadd.xlane.f32.xlu0 %v165_v14 }
 0x20b   :  { %v117_v15 = vpop.xlane.xlu0 %116 }
 0x20c   :  { %166 = vrcp.f32 %v117_v15 }
 0x219   :  { %v167_v16 = vpop.eup %166 }
 0x21a   :  { %v119_v17 = vmul.f32 %v167_v16, %v117_v15 }
 0x21c   :  { %v120_v18 = vsub.f32 2.0, %v119_v17 }
 0x21e   :  { %v121_v19 = vmul.f32 %v167_v16, %v120_v18 }
 0x220   :  { %v122_v20 = vmul.f32 %v165_v14, %v121_v19 }
 0x222   :  { %123 = vst [vmem:[#allocation7] sm:$0xff] %v122_v20 }
 0x223   :  { %219 = shalt.err (!%p216_p0)
}
 0x224   :  { %133 = dma.vmem_to_hbm [thread:$0]  %s131_s25, 128, %s276_s3, [#allocation4]  }
 0x225   :  { %232 = dma.done.wait [#allocation4], 128  }
 0x226   :  { %233 = vsyncadd [#allocation4], 4294967168 }
 0x227   :  { %137 = vsyncpa [#allocation3], 1 }
 0x228   :  { %138 = vsyncpa [#allocation6], 1 }
 0x229   :  { %139 = vsyncpa [#allocation4], 1 }

</bundles_post_ra>
